<compile_context>
chip_gen: v7x
topology: tpu7x:2x2x1
jax: 0.10.0
libtpu: 0.0.40
codegen_flags: <defaults>
</compile_context>

<pallas_src>
import functools

import jax
import jax.numpy as jnp
from jax.experimental import pallas as pl
from jax.experimental.pallas import tpu as pltpu


def _soft_iou_kernel(x_ref, t_ref, inter_ref, union_ref,
                     inter_acc, union_acc, *, hw_total):
    k = pl.program_id(1)

    @pl.when(k == 0)
    def _():
        inter_acc[...] = jnp.zeros_like(inter_acc)
        union_acc[...] = jnp.zeros_like(union_acc)

    x = x_ref[...].astype(jnp.float32)              # (Bn, C, THW)
    Bn, C, THW = x.shape
    tgt = t_ref[...]                                # (Bn, THW) int32

    needs_mask = (hw_total % THW) != 0              # static (Python) decision
    if needs_mask:
        lane = jax.lax.broadcasted_iota(jnp.int32, (Bn, C, THW), 2)
        valid = (k * THW + lane) < hw_total
        # keep exp finite on padded lanes of the last tile
        x = jnp.where(valid, x, 0.0)

    # softmax over the channel (sublane) axis
    m = jnp.max(x, axis=1, keepdims=True)           # (Bn, 1, THW)
    e = jnp.exp(x - m)                              # (Bn, C, THW)
    denom = jnp.sum(e, axis=1, keepdims=True)       # (Bn, 1, THW)
    inv = 1.0 / denom                               # one divide per column, not C
    p = e * inv                                     # (Bn, C, THW)

    # one-hot as a boolean mask (no int->float convert, no multiply)
    ch = jax.lax.broadcasted_iota(jnp.int32, (Bn, C, THW), 1)
    mask = ch == tgt[:, None, :]                    # (Bn, C, THW) bool
    if needs_mask:
        mask = jnp.logical_and(mask, valid)
        p_for_sum = jnp.where(valid, p, 0.0)
    else:
        p_for_sum = p

    inter_t = jnp.sum(jnp.where(mask, p, 0.0), axis=2)    # (Bn, C)
    p_sum = jnp.sum(p_for_sum, axis=2)                    # (Bn, C)
    cnt = jnp.sum(mask.astype(jnp.float32), axis=2)       # (Bn, C)
    union_t = p_sum + cnt - inter_t                       # = sum(p + 1h - p*1h)

    inter_acc[...] += inter_t
    union_acc[...] += union_t

    @pl.when(k == pl.num_programs(1) - 1)
    def _():
        inter_ref[...] = inter_acc[...]
        union_ref[...] = union_acc[...]


def soft_iou_loss(logits, target, n_classes, *, block_hw=None, block_n=None):
    """logits: (N, C, H, W) float; target: (N, H, W) int. Returns scalar loss."""
    N, C, H, W = logits.shape
    assert C == n_classes
    HW = H * W

    x = logits.reshape(N, C, HW)                    # keep native dtype (bf16 ok)
    t = target.reshape(N, HW).astype(jnp.int32)
    itemsize = jnp.dtype(x.dtype).itemsize

    # ---- HW tile: multiple of 128 (or full HW), keeping the double-buffered
    #      logits stream a few MiB at most (fits default scoped VMEM on all gens).
    if block_hw is None:
        if HW % 128 != 0 and HW <= 4096:
            block_hw = HW                           # full-extent block
        else:
            budget = 2 * 1024 * 1024                # bytes per logits buffer
            lanes = max(128, (budget // max(1, C * itemsize)) // 128 * 128)
            block_hw = max(128, min(lanes, (HW // 128) * 128))
    block_hw = min(block_hw, HW)

    # ---- fold small batches into one block so each grid step moves real data
    if block_n is None:
        block_n = N if N * C * block_hw * itemsize <= (1 << 20) else 1

    grid = (pl.cdiv(N, block_n), pl.cdiv(HW, block_hw))

    grid_spec = pltpu.PrefetchScalarGridSpec(
        num_scalar_prefetch=0,
        grid=grid,
        in_specs=[
            pl.BlockSpec((block_n, C, block_hw), lambda n, k: (n, 0, k)),
            pl.BlockSpec((block_n, block_hw), lambda n, k: (n, k)),
        ],
        out_specs=[
            pl.BlockSpec((block_n, C), lambda n, k: (n, 0)),
            pl.BlockSpec((block_n, C), lambda n, k: (n, 0)),
        ],
        scratch_shapes=[
            pltpu.VMEM((block_n, C), jnp.float32),
            pltpu.VMEM((block_n, C), jnp.float32),
        ],
    )

    inter, union = pl.pallas_call(
        functools.partial(_soft_iou_kernel, hw_total=HW),
        out_shape=(
            jax.ShapeDtypeStruct((N, C), jnp.float32),
            jax.ShapeDtypeStruct((N, C), jnp.float32),
        ),
        grid_spec=grid_spec,
        compiler_params=pltpu.CompilerParams(
            dimension_semantics=("parallel", "arbitrary")),
    )(x, t)

    # Tiny (N, C) glue: per-class IoU ratio and mean, matching PyTorch exactly.
    loss = inter / (union + 1e-16)
    return -jnp.mean(loss)


def soft_iou_loss_ref(logits, target, n_classes):
    """Pure-JAX reference mirroring the PyTorch forward."""
    N, C, H, W = logits.shape
    pred = jax.nn.softmax(logits.astype(jnp.float32), axis=1)
    one_hot = jax.nn.one_hot(target, n_classes, axis=1, dtype=jnp.float32)
    inter = (pred * one_hot).reshape(N, C, -1).sum(-1)
    union = (pred + one_hot - pred * one_hot).reshape(N, C, -1).sum(-1)
    return -jnp.mean(inter / (union + 1e-16))


if __name__ == "__main__":
    N, C, H, W = 2, 4, 16, 16
    key = jax.random.PRNGKey(0)
    k1, k2 = jax.random.split(key)
    logits = jax.random.normal(k1, (N, C, H, W), dtype=jnp.float32)
    target = jax.random.randint(k2, (N, H, W), 0, C, dtype=jnp.int32)

    # block_hw=128 exercises the tiled HW reduction (HW=256 -> 2 k-steps).
    out = soft_iou_loss(logits, target, C, block_hw=128)
    out = jax.block_until_ready(out)

    ref = soft_iou_loss_ref(logits, target, C)
    assert jnp.allclose(out, ref, atol=1e-5, rtol=1e-5), (out, ref)
    print("KERNEL_OK")
</pallas_src>

<mosaic_0001>
module attributes {stable_mosaic.version = 11 : i64} {
  func.func @_soft_iou_kernel(%arg0: i32, %arg1: i32, %arg2: memref<2x4x128xf32, #tpu.memory_space<vmem>>, %arg3: memref<2x128xi32, #tpu.memory_space<vmem>>, %arg4: memref<2x4xf32, #tpu.memory_space<vmem>>, %arg5: memref<2x4xf32, #tpu.memory_space<vmem>>, %arg6: memref<2x4xf32, #tpu.memory_space<vmem>>, %arg7: memref<2x4xf32, #tpu.memory_space<vmem>>) attributes {dimension_semantics = [#tpu.dimension_semantics<parallel>, #tpu.dimension_semantics<arbitrary>], iteration_bounds = array<i64: 1, 2>, scalar_prefetch = 0 : i64, scratch_operands = 2 : i64, tpu.core_type = #tpu.core_type<tc>, window_params = [{transform_indices = @transform_0, window_bounds = array<i64: 2, 4, 128>}, {transform_indices = @transform_1, window_bounds = array<i64: 2, 128>}, {transform_indices = @transform_2, window_bounds = array<i64: 2, 4>}, {transform_indices = @transform_3, window_bounds = array<i64: 2, 4>}]} {
    %c0_i32 = arith.constant 0 : i32
    %0 = arith.cmpi eq, %arg1, %c0_i32 : i32
    %1 = arith.extui %0 : i1 to i32
    %c0_i32_0 = arith.constant 0 : i32
    %2 = arith.cmpi ne, %1, %c0_i32_0 : i32
    scf.if %2 {
      %cst_20 = arith.constant 0.000000e+00 : f32
      %38 = vector.broadcast %cst_20 : f32 to vector<2x4xf32>
      %c0_21 = arith.constant 0 : index
      %c0_22 = arith.constant 0 : index
      %39 = vector.load %arg6[%c0_21, %c0_22] : memref<2x4xf32, #tpu.memory_space<vmem>>, vector<2x4xf32>
      tpu.vector_store %arg6[%c0_21, %c0_22], %38 {strides = array<i32>} : memref<2x4xf32, #tpu.memory_space<vmem>>, vector<2x4xf32>,
      %cst_23 = arith.constant 0.000000e+00 : f32
      %40 = vector.broadcast %cst_23 : f32 to vector<2x4xf32>
      %c0_24 = arith.constant 0 : index
      %c0_25 = arith.constant 0 : index
      %41 = vector.load %arg7[%c0_24, %c0_25] : memref<2x4xf32, #tpu.memory_space<vmem>>, vector<2x4xf32>
      tpu.vector_store %arg7[%c0_24, %c0_25], %40 {strides = array<i32>} : memref<2x4xf32, #tpu.memory_space<vmem>>, vector<2x4xf32>,
    } else {
    }
    %c0 = arith.constant 0 : index
    %c0_1 = arith.constant 0 : index
    %c0_2 = arith.constant 0 : index
    %3 = vector.load %arg2[%c0, %c0_1, %c0_2] : memref<2x4x128xf32, #tpu.memory_space<vmem>>, vector<2x4x128xf32>
    %c0_3 = arith.constant 0 : index
    %c0_4 = arith.constant 0 : index
    %4 = vector.load %arg3[%c0_3, %c0_4] : memref<2x128xi32, #tpu.memory_space<vmem>>, vector<2x128xi32>
    %cst = arith.constant dense<0xFF800000> : vector<2x128xf32>
    %5 = vector.multi_reduction <maximumf>, %3, %cst [1] : vector<2x4x128xf32> to vector<2x128xf32>
    %6 = vector.shape_cast %5 : vector<2x128xf32> to vector<2x1x128xf32>
    %7 = vector.broadcast %6 : vector<2x1x128xf32> to vector<2x4x128xf32>
    %8 = arith.subf %3, %7 : vector<2x4x128xf32>
    %9 = math.exp %8 : vector<2x4x128xf32>
    %cst_5 = arith.constant dense<0.000000e+00> : vector<2x128xf32>
    %10 = vector.multi_reduction <add>, %9, %cst_5 [1] : vector<2x4x128xf32> to vector<2x128xf32>
    %11 = vector.shape_cast %10 : vector<2x128xf32> to vector<2x1x128xf32>
    %cst_6 = arith.constant 1.000000e+00 : f32
    %12 = vector.broadcast %cst_6 : f32 to vector<2x1x128xf32>
    %13 = arith.divf %12, %11 : vector<2x1x128xf32>
    %14 = vector.broadcast %13 : vector<2x1x128xf32> to vector<2x4x128xf32>
    %15 = arith.mulf %9, %14 : vector<2x4x128xf32>
    %16 = tpu.iota {dimensions = array<i32: 1>} : vector<2x4x128xi32>
    %17 = vector.shape_cast %4 : vector<2x128xi32> to vector<2x1x128xi32>
    %18 = vector.broadcast %17 : vector<2x1x128xi32> to vector<2x4x128xi32>
    %19 = arith.cmpi eq, %16, %18 : vector<2x4x128xi32>
    %cst_7 = arith.constant 0.000000e+00 : f32
    %20 = vector.broadcast %cst_7 : f32 to vector<2x4x128xf32>
    %21 = arith.select %19, %15, %20 : vector<2x4x128xi1>, vector<2x4x128xf32>
    %cst_8 = arith.constant dense<0.000000e+00> : vector<2x4xf32>
    %22 = vector.multi_reduction <add>, %21, %cst_8 [2] : vector<2x4x128xf32> to vector<2x4xf32>
    %cst_9 = arith.constant dense<0.000000e+00> : vector<2x4xf32>
    %23 = vector.multi_reduction <add>, %15, %cst_9 [2] : vector<2x4x128xf32> to vector<2x4xf32>
    %24 = arith.extui %19 : vector<2x4x128xi1> to vector<2x4x128xi32>
    %25 = arith.sitofp %24 : vector<2x4x128xi32> to vector<2x4x128xf32>
    %cst_10 = arith.constant dense<0.000000e+00> : vector<2x4xf32>
    %26 = vector.multi_reduction <add>, %25, %cst_10 [2] : vector<2x4x128xf32> to vector<2x4xf32>
    %27 = arith.addf %23, %26 : vector<2x4xf32>
    %28 = arith.subf %27, %22 : vector<2x4xf32>
    %c0_11 = arith.constant 0 : index
    %c0_12 = arith.constant 0 : index
    %29 = vector.load %arg6[%c0_11, %c0_12] : memref<2x4xf32, #tpu.memory_space<vmem>>, vector<2x4xf32>
    %30 = arith.addf %29, %22 : vector<2x4xf32>
    %c0_13 = arith.constant 0 : index
    %c0_14 = arith.constant 0 : index
    %31 = vector.load %arg6[%c0_13, %c0_14] : memref<2x4xf32, #tpu.memory_space<vmem>>, vector<2x4xf32>
    tpu.vector_store %arg6[%c0_13, %c0_14], %30 {strides = array<i32>} : memref<2x4xf32, #tpu.memory_space<vmem>>, vector<2x4xf32>,
    %c0_15 = arith.constant 0 : index
    %c0_16 = arith.constant 0 : index
    %32 = vector.load %arg7[%c0_15, %c0_16] : memref<2x4xf32, #tpu.memory_space<vmem>>, vector<2x4xf32>
    %33 = arith.addf %32, %28 : vector<2x4xf32>
    %c0_17 = arith.constant 0 : index
    %c0_18 = arith.constant 0 : index
    %34 = vector.load %arg7[%c0_17, %c0_18] : memref<2x4xf32, #tpu.memory_space<vmem>>, vector<2x4xf32>
    tpu.vector_store %arg7[%c0_17, %c0_18], %33 {strides = array<i32>} : memref<2x4xf32, #tpu.memory_space<vmem>>, vector<2x4xf32>,
    %c1_i32 = arith.constant 1 : i32
    %35 = arith.cmpi eq, %arg1, %c1_i32 : i32
    %36 = arith.extui %35 : i1 to i32
    %c0_i32_19 = arith.constant 0 : i32
    %37 = arith.cmpi ne, %36, %c0_i32_19 : i32
    scf.if %37 {
      %c0_20 = arith.constant 0 : index
      %c0_21 = arith.constant 0 : index
      %38 = vector.load %arg6[%c0_20, %c0_21] : memref<2x4xf32, #tpu.memory_space<vmem>>, vector<2x4xf32>
      %c0_22 = arith.constant 0 : index
      %c0_23 = arith.constant 0 : index
      %39 = vector.load %arg4[%c0_22, %c0_23] : memref<2x4xf32, #tpu.memory_space<vmem>>, vector<2x4xf32>
      tpu.vector_store %arg4[%c0_22, %c0_23], %38 {strides = array<i32>} : memref<2x4xf32, #tpu.memory_space<vmem>>, vector<2x4xf32>,
      %c0_24 = arith.constant 0 : index
      %c0_25 = arith.constant 0 : index
      %40 = vector.load %arg7[%c0_24, %c0_25] : memref<2x4xf32, #tpu.memory_space<vmem>>, vector<2x4xf32>
      %c0_26 = arith.constant 0 : index
      %c0_27 = arith.constant 0 : index
      %41 = vector.load %arg5[%c0_26, %c0_27] : memref<2x4xf32, #tpu.memory_space<vmem>>, vector<2x4xf32>
      tpu.vector_store %arg5[%c0_26, %c0_27], %40 {strides = array<i32>} : memref<2x4xf32, #tpu.memory_space<vmem>>, vector<2x4xf32>,
    } else {
    }
    return
  }
  func.func @transform_0(%arg0: i32, %arg1: i32) -> (i32, i32, i32) {
    %c0_i32 = arith.constant 0 : i32
    %c0_i32_0 = arith.constant 0 : i32
    return %arg0, %c0_i32, %arg1 : i32, i32, i32
  }
  func.func @transform_1(%arg0: i32, %arg1: i32) -> (i32, i32) {
    %c0_i32 = arith.constant 0 : i32
    return %arg0, %arg1 : i32, i32
  }
  func.func @transform_2(%arg0: i32, %arg1: i32) -> (i32, i32) {
    %c0_i32 = arith.constant 0 : i32
    %c0_i32_0 = arith.constant 0 : i32
    return %arg0, %c0_i32 : i32, i32
  }
  func.func @transform_3(%arg0: i32, %arg1: i32) -> (i32, i32) {
    %c0_i32 = arith.constant 0 : i32
    %c0_i32_0 = arith.constant 0 : i32
    return %arg0, %c0_i32 : i32, i32
  }
}

</mosaic_0001>

<bundles_post_ra>
// kernel: tpu_custom_call.1
= control target key start
LH: loop header
LB: loop body
LE: loop exit
PB: predicated region body
PF: predicated region fallthrough
CT: control target
= control target key end

     0   :  { %9 = vsyncpa [#allocation5], 0  ;;  %s1086_s0 = inlined_call_operand.hbm [shape: f32[2,4,256], index: 0, kind: input, shape index: {}]   ;;  %s1087_s1 = inlined_call_operand.hbm [shape: s32[2,256], index: 1, kind: input, shape index: {}]   ;;  %s1088_s2 = inlined_call_operand.hbm [shape: f32[2,4], index: 2, kind: output, shape index: {0}]   ;;  %s1089_s3 = inlined_call_operand.hbm [shape: f32[2,4], index: 3, kind: output, shape index: {1}]  }
   0x1   :  { %11 = vsyncpa [#allocation5 + $0x1], 0 }
   0x2   :  { %12 = vsyncpa [#allocation8], 0 }
   0x3   :  { %14 = vsyncpa [#allocation8 + $0x1], 0 }
   0x4   :  { %15 = vsyncpa [#allocation6], 0 }
   0x5   :  { %16 = vsyncpa [#allocation11], 0  ;;  %s837_s12 = smov 0   ;;  %s839_s13 = smov 0  }
   0x6   :  { %s841_s14 = smov 0   ;;  %s843_s15 = smov 0  }
   0x7   :  { %s845_s16 = smov 0   ;;  %s847_s17 = smov 0  }
   0x8 LB: > { %s522_s18 = sadd.s32 4294967295, %s805_s17   ;;  %s31_s19 = sadd.s32 1, %s801_s16  ;;  %s805_s17 = sphi %s847_s17, %s22_s17   ;;  %s801_s16 = sphi %s845_s16, %s1103_s16   ;;  %s797_s15 = sphi %s843_s15, %s1102_s15   ;;  %s793_s14 = sphi %s841_s14, %s1101_s14   ;;  %s789_s13 = sphi %s839_s13, %s1100_s13   ;;  %s785_s12 = sphi %s837_s12, %s1099_s12  }
   0x9   : > { %p32_p0 = scmp.ge.s32.totalorder %s31_s19, 2  ;;  %s43_s20 = sadd.s32 1, %s793_s14 }
   0xa   : > { %p50_p1 = scmp.ne.s32.totalorder %s793_s14, %s789_s13  ;;  %p51_p2 = scmp.eq.s32.totalorder %s805_s17, 0 }
   0xb   : > { %s1105_s19 = smov (%p32_p0, %s31_s19), 0  ;;  %p56_p4 = scmp.ne.s32.totalorder %s789_s13, %s785_s12 }
   0xc   : > { %p873_p3 = por %p51_p2, %p50_p1  ;;  %s39_s22 = ssub.s32 %s801_s16, %s1105_s19 }
   0xd   : > { %p57_p5 = scmp.eq.s32.totalorder %s522_s18, 0  ;;  %p41_p6 = scmp.eq.s32.totalorder %s39_s22, 0 }
   0xe   : > { %p562_p8 = scmp.lt.s32.totalorder %s805_s17, 2  ;;  %s891_s25 = sand.u32 1, %s793_s14  }
   0xf   : > { %p882_p7 = por %p57_p5, %p56_p4  ;;  %s526_s26 = sshll.u32 %s801_s16, 6 }
  0x10   : > { %s888_s24 = scalar_select %p41_p6, %s793_s14, %s43_s20  }
  0x11   : > { %s1092_s23 = scalar_select %p882_p7, 1, 0 }
  0x12   : > { %s525_s27 = sshll.u32 %s891_s25, 3  ;;  %s898_s30 = scalar_lea.hbm %s1086_s0, %s526_s26 }
  0x13   : > { %s164_s4 = scalar_lea.vmem [#allocation4], %s525_s27  ;;  %p902_p9 = pnand %p562_p8, %p873_p3 }
  0x14   : > { %s173_s5 = sshll.u32 %s164_s4, 4  ;;  %s161_s7 = scalar_lea.sflag [#allocation5], %s891_s25  ;;  %s906_s5 = int_to_ptr.vmem [resolvable:$true] %s173_s5 }
  0x15   : > { %s631_s8 = scalar_lea.hbm %s898_s30, 128  ;;  %p633_p12 = pneg %p902_p9 }
  0x16   : > { %p632_p11 = scmp.ne.s32.totalorder %s898_s30, %s631_s8  ;;  %s636_s11 = scalar_lea.hbm %s1086_s0, 256 }
  0x17   : > { %p637_p1 = scmp.lt.u32.totalorder %s898_s30, %s1086_s0  ;;  %p638_p2 = scmp.lt.u32.totalorder %s636_s11, %s631_s8 }
  0x18   : > { %p634_p13 = pnand %p633_p12, %p632_p11  ;;  %p640_p4 = scmp.lt.u32.totalorder %s631_s8, %s898_s30 }
  0x19   : > { %p639_p3 = por %p638_p2, %p637_p1 }
  0x1a   : > { %p635_p0 = pneg %p634_p13 }
  0x1b   : > { %p641_p5 = por %p640_p4, %p639_p3 }
  0x1d   : > { %p642_p6 = pnand %p641_p5, %p635_p0 }
  0x1f   : > { %645 = shalt.err (!%p642_p6)
}
  0x20   : > { %s646_s21 = scalar_lea.vmem %s906_s5, 128  ;;  %s807_s22 = smov [#allocation4]  }
  0x21   : > { %p647_p8 = scmp.ne.s32.totalorder %s906_s5, %s646_s21  ;;  %s651_s26 = sshll.u32 %s807_s22, 4  ;;  %s652_s26 = int_to_ptr.vmem [resolvable:$false] %s651_s26 }
  0x22   : > { %s653_s27 = scalar_lea.vmem %s652_s26, 256  ;;  %p654_p10 = scmp.lt.s32.totalorder %s906_s5, %s652_s26 }
  0x23   : > { %p649_p11 = pnand %p647_p8, %p633_p12  ;;  %p655_p1 = scmp.lt.s32.totalorder %s653_s27, %s646_s21 }
  0x25   : > { %p650_p13 = pneg %p649_p11  ;;  %p656_p2 = por %p655_p1, %p654_p10 }
  0x27   : > { %p657_p3 = pnand %p656_p2, %p650_p13 }
  0x29   : > { %660 = shalt.err (!%p657_p3)
}
  0x2a   : > { %s808_s28 = smov 128   ;;  %s809_s29 = smov 64  }
  0x2b   : > { %s810_s4 = smov 4   ;;  %p201_p0 = scmp.lt.s32.totalorder %s805_s17, 3 }
  0x2c   : > { %558 = dma.hbm_to_vmem [thread:$0]  (!%p902_p9), %s898_s30, 128, %s906_s5, %s161_s7, %s808_s28, %s809_s29, %s810_s4  }
  0x2d   : > { %s527_s8 = sshll.u32 %s891_s25, 1  ;;  %s528_s9 = sshll.u32 %s801_s16, 5 }
  0x2e   : > { %p1094_p10 = scmp.ge.s32.totalorder %s805_s17, 1  ;;  %s949_s20 = scalar_lea.hbm %s1087_s1, %s528_s9 }
  0x2f   : > { %s187_s21 = scalar_lea.vmem [#allocation7], %s527_s8  ;;  %s184_s30 = scalar_lea.sflag [#allocation8], %s891_s25 }
  0x30   : > { %p942_p4 = pnand %p1094_p10, %p201_p0  ;;  %s196_s22 = sshll.u32 %s187_s21, 4  ;;  %s197_s22 = int_to_ptr.vmem [resolvable:$true] %s196_s22 }
  0x31   : > { %s661_s5 = scalar_lea.hbm %s949_s20, 32  ;;  %s666_s27 = scalar_lea.hbm %s1087_s1, 64 }
  0x32   : > { %s1095_s10 = scalar_select %p942_p4, 1, 0 }
  0x33   : > { %p662_p5 = scmp.ne.s32.totalorder %s949_s20, %s661_s5  ;;  %p667_p11 = scmp.lt.u32.totalorder %s949_s20, %s1087_s1 }
  0x34   : > { %p668_p13 = scmp.lt.u32.totalorder %s666_s27, %s661_s5  ;;  %p670_p2 = scmp.lt.u32.totalorder %s661_s5, %s949_s20 }
  0x35   : > { %p664_p6 = pnand %p662_p5, %p633_p12 }
  0x36   : > { %p669_p1 = por %p668_p13, %p667_p11 }
  0x37   : > { %p665_p8 = pneg %p664_p6 }
  0x38   : > { %p671_p3 = por %p670_p2, %p669_p1 }
  0x3a   : > { %p672_p0 = pnand %p671_p3, %p665_p8 }
  0x3c   : > { %675 = shalt.err (!%p672_p0)
}
  0x3d   : > { %s676_s25 = scalar_lea.vmem %s197_s22, 32  ;;  %s811_s4 = smov [#allocation7]  }
  0x3e   : > { %p677_p10 = scmp.ne.s32.totalorder %s197_s22, %s676_s25  ;;  %s681_s8 = sshll.u32 %s811_s4, 4  ;;  %s682_s8 = int_to_ptr.vmem [resolvable:$false] %s681_s8 }
  0x3f   : > { %s683_s9 = scalar_lea.vmem %s682_s8, 64  ;;  %p684_p7 = scmp.lt.s32.totalorder %s197_s22, %s682_s8 }
  0x40   : > { %p679_p5 = pnand %p677_p10, %p633_p12  ;;  %p685_p4 = scmp.lt.s32.totalorder %s683_s9, %s676_s25 }
  0x42   : > { %p680_p6 = pneg %p679_p5  ;;  %p686_p11 = por %p685_p4, %p684_p7 }
  0x44   : > { %p687_p13 = pnand %p686_p11, %p680_p6 }
  0x46   : > { %690 = shalt.err (!%p687_p13)
}
  0x47   : > { %561 = dma.hbm_to_vmem [thread:$0]  (!%p902_p9), %s949_s20, 32, %s197_s22, %s184_s30  }
  0x48   : > { %p1096_p8 = scmp.ne.s32.totalorder %s1095_s10, 0 }
  0x49   : > { %s207_s11 = sand.u32 (!%p1096_p8), 1, %s789_s13   ;;  %p1097_p12 = scmp.ne.s32.totalorder (!%p1096_p8), %s1092_s23, 0 }
  0x4a   : > { %205 = sbr.rel (%p1096_p8) target bundleno = 364 (0x16c), region = 28  ;;  %s530_s12 = sshll.u32 (!%p1096_p8), %s207_s11, 3 }
  0x4b   : > { %s208_s21 = scalar_lea.sflag (!%p1096_p8), [#allocation5], %s207_s11  ;;  %s211_s5 = scalar_lea.vmem (!%p1096_p8), [#allocation4], %s530_s12 }
  0x51   : > { %768 = dma.done.wait (%p1097_p12), %s208_s21, 128  }
  0x52   : > { %770 = vsyncadd (%p1097_p12), %s208_s21, 4294967168  ;;  %s531_s7 = sshll.u32 %s207_s11, 1  ;;  %s217_s26 = scalar_lea.sflag [#allocation8], %s207_s11 }
  0x53   : > { %s220_s6 = scalar_lea.vmem [#allocation7], %s531_s7 }
  0x54   : > { %772 = dma.done.wait (%p1097_p12), %s217_s26, 32  }
  0x55   : > { %774 = vsyncadd (%p1097_p12), %s217_s26, 4294967264  ;;  %p532_p7 = scmp.ne.s32.totalorder %s797_s15, 0 }
  0x56   : > { %vm248_vm0 = vcmask (!%p532_p7), 25600   ;;  %v812_v0 = vmov (!%p532_p7), 0.0  }
  0x57   : > { %247 = sbr.rel (%p532_p7) target bundleno = 94 (0x5e), region = 40  ;;  %249 = vst.msk [vmem:[#allocation2] sm:$0x3] (!%p532_p7), %vm248_vm0, %v812_v0  ;;  %250 = vst.msk [vmem:[#allocation3] sm:$0x3] (!%p532_p7), %vm248_vm0, %v812_v0 }
  0x5e PF: > { %vm254_vm1 = vcmask 1043456   ;;  %v295_v1 = vlaneseq  ;;  %v251_v2 = vld [vmem:[%s211_s5] sm:$0xf]  ;;  %v252_v3 = vld [vmem:[%s211_s5 + $0x4] sm:$0xf]  ;;  %v814_v28 = vmov 0.0  }
  0x5f   : > { %v813_v5 = vmov 1966171168   ;;  %v255_v7 = vsel %vm254_vm1, %v251_v2, -inf  ;;  %v262_v8 = vsel %vm254_vm1, %v252_v3, -inf  ;;  %vm370_vm4 = vcmask 1041409   ;;  %p536_p9 = scmp.ne.s32.totalorder %s797_s15, 1 }
  0x60   : > { %v984_v4 = vshrl.u32 %v295_v1, 7  ;;  %v306_v6 = vunpack.c.l.s4 %v813_v5  ;;  %v533_v9 = vld.sshfl [vmem:[%s220_s6] sm:$0x11 pattern:$0x75316420]  ;;  %v256_v10 = vrot.slane %v255_v7, 4 }
  0x61   : > { %v263_v11 = vrot.slane %v262_v8, 4  ;;  %v304_v13 = vcombine.high %v533_v9, %v533_v9  ;;  %v361_v5 = vand.u32 127, %v295_v1  ;;  %vm374_vm5 = vcmask 25600  }
  0x62   : > { %v307_v12 = vunpack.c.0.s8 %v306_v6  ;;  %v257_v14 = vmax.f32 %v255_v7, %v256_v10  ;;  %v321_v17 = vsub.s32 0, %v984_v4 }
  0x63   : > { %v264_v15 = vmax.f32 %v262_v8, %v263_v11  ;;  %v364_v7 = vsub.s32 %v361_v5, %v984_v4 }
  0x64   : > { %v310_v16 = vsub.s32 %v307_v12, %v984_v4  ;;  %v258_v18 = vrot.slane %v257_v14, 2 }
  0x65   : > { %v265_v19 = vrot.slane %v264_v15, 2 }
  0x66   : > { %v311_v20 = vrot.slane %v533_v9, %v310_v16  ;;  %v318_v21 = vrot.slane %v304_v13, %v310_v16  ;;  %v259_v22 = vmax.f32 %v257_v14, %v258_v18 }
  0x67   : > { %v266_v23 = vmax.f32 %v264_v15, %v265_v19  ;;  %v357_v15 = vld [vmem:[#allocation2] sm:$0x3]  ;;  %v376_v19 = vld [vmem:[#allocation3] sm:$0x3] }
  0x68   : > { %v322_v24 = vrot.slane %v311_v20, %v321_v17  ;;  %v326_v25 = vrot.slane %v318_v21, %v321_v17  ;;  %v260_v26 = vrot.slane %v259_v22, 1 }
  0x69   : > { %v267_v27 = vrot.slane %v266_v23, 1 }
  0x6a   : > { %vm327_vm2 = vcmp.eq.s32.totalorder %v984_v4, %v322_v24  ;;  %vm328_vm3 = vcmp.eq.s32.totalorder %v984_v4, %v326_v25  ;;  %v261_v30 = vmax.f32 %v259_v22, %v260_v26 }
  0x6b   : > { %v534_v29 = vsel %vm327_vm2, 1.0, %v814_v28  ;;  %v535_v31 = vsel %vm328_vm3, 1.0, %v814_v28  ;;  %v268_v32 = vmax.f32 %v266_v23, %v267_v27 }
  0x6c   : > { %v347_v33 = vsel %vm254_vm1, %v534_v29, 0.0  ;;  %v269_v34 = vsub.f32 %v251_v2, %v261_v30  ;;  %v350_v36 = vsel %vm254_vm1, %v535_v31, 0.0 }
  0x6d   : > { %348 = vadd.xlane.f32.xlu1 %v347_v33  ;;  %v270_v35 = vsub.f32 %v252_v3, %v268_v32 }
  0x6e   : > { %v271_v37 = vmul.f32 1.442695, %v269_v34 }
  0x6f   : > { %v273_v38 = vmul.f32 1.442695, %v270_v35 }
  0x70   : > { %623 = vpow2.f32 %v271_v37 }
  0x71   : > { %351 = vadd.xlane.f32.xlu1 %v350_v36  ;;  %625 = vpow2.f32 %v273_v38 }
  0x7a   : > { %v624_v39 = vpop.eup %623 }
  0x7b   : > { %v626_v40 = vpop.eup %625  ;;  %v275_v41 = vsel %vm254_vm1, %v624_v39, 0.0 }
  0x7c   : > { %v276_v42 = vrot.slane %v275_v41, 4  ;;  %v282_v43 = vsel %vm254_vm1, %v626_v40, 0.0 }
  0x7d   : > { %v283_v44 = vrot.slane %v282_v43, 4 }
  0x7e   : > { %v277_v45 = vadd.f32 %v276_v42, %v275_v41 }
  0x7f   : > { %v284_v46 = vadd.f32 %v283_v44, %v282_v43 }
  0x80   : > { %v278_v47 = vrot.slane %v277_v45, 2 }
  0x81   : > { %v285_v48 = vrot.slane %v284_v46, 2 }
  0x82   : > { %v279_v49 = vadd.f32 %v278_v47, %v277_v45 }
  0x83   : > { %v286_v50 = vadd.f32 %v285_v48, %v284_v46 }
  0x84   : > { %v280_v51 = vrot.slane %v279_v49, 1 }
  0x85   : > { %v287_v52 = vrot.slane %v286_v50, 1 }
  0x86   : > { %v281_v53 = vadd.f32 %v280_v51, %v279_v49 }
  0x87   : > { %v288_v54 = vadd.f32 %v287_v52, %v286_v50 }
  0x88   : > { %627 = vrcp.f32 %v281_v53 }
  0x89   : > { %629 = vrcp.f32 %v288_v54 }
  0x92   : > { %v628_v55 = vpop.eup %627 }
  0x93   : > { %v630_v56 = vpop.eup %629  ;;  %v293_v57 = vmul.f32 %v628_v55, %v624_v39 }
  0x94   : > { %v294_v58 = vmul.f32 %v630_v56, %v626_v40 }
  0x95   : > { %v337_v59 = vsel %vm254_vm1, %v293_v57, 0.0  ;;  %v329_v63 = vsel %vm327_vm2, %v293_v57, 0.0 }
  0x96   : > { %338 = vadd.xlane.f32.xlu0 %v337_v59  ;;  %v330_v60 = vsel %vm328_vm3, %v294_v58, 0.0  ;;  %v340_v61 = vsel %vm254_vm1, %v294_v58, 0.0  ;;  %v331_v0 = vsel %vm254_vm1, %v329_v63, 0.0 }
  0x97   : > { %v334_v62 = vsel %vm254_vm1, %v330_v60, 0.0 }
  0x98   : > { %335 = vadd.xlane.f32.xlu1 %v334_v62 }
  0x9a   : > { %341 = vadd.xlane.f32.xlu0 %v340_v61 }
  0x9e   : > { %332 = vadd.xlane.f32.xlu0 %v331_v0 }
  0xfa   : > { %v349_v2 = vpop.xlane.xlu1 %348 }
  0xfe   : > { %v352_v3 = vpop.xlane.xlu1 %351 }
 0x123   : > { %v339_v6 = vpop.xlane.xlu0 %338 }
 0x124   : > { %v353_v11 = vadd.f32 %v349_v2, %v339_v6 }
 0x125   : > { %v336_v9 = vpop.xlane.xlu1 %335 }
 0x126   : > { %v369_v13 = vrot.slane %v336_v9, %v364_v7 }
 0x127   : > { %v342_v8 = vpop.xlane.xlu0 %341 }
 0x128   : > { %v354_v10 = vadd.f32 %v352_v3, %v342_v8 }
 0x12a   : > { %v356_v12 = vsub.f32 %v354_v10, %v336_v9 }
 0x12b   : > { %v333_v14 = vpop.xlane.xlu0 %332 }
 0x12c   : > { %v355_v16 = vsub.f32 %v353_v11, %v333_v14  ;;  %v365_v17 = vrot.slane %v333_v14, %v364_v7  ;;  %v386_v18 = vrot.slane %v356_v12, %v364_v7 }
 0x12d   : > { %394 = sbr.rel (%p536_p9) target bundleno = 316 (0x13c), region = 44 }
 0x12e   : > { %v371_v20 = vsel %vm370_vm4, %v369_v13, %v365_v17  ;;  %v382_v21 = vrot.slane %v355_v16, %v364_v7 }
 0x12f   : > { %v373_v1 = vadd.f32 %v371_v20, %v357_v15 }
 0x130   : > { %v387_v22 = vsel %vm370_vm4, %v386_v18, %v382_v21 }
 0x131   : > { %375 = vst.msk [vmem:[#allocation2] sm:$0x3] %vm374_vm5, %v373_v1  ;;  %v389_v4 = vadd.f32 %v387_v22, %v376_v19 }
 0x133   : > { %390 = vst.msk [vmem:[#allocation3] sm:$0x3] %vm374_vm5, %v389_v4 }
 0x138   : > { %v395_v23 = vld [vmem:[#allocation2] sm:$0x3] }
 0x139   : > { %396 = vst.msk [vmem:[#allocation9] sm:$0x3] %vm374_vm5, %v395_v23 }
 0x13a   : > { %v397_v24 = vld [vmem:[#allocation3] sm:$0x3] }
 0x13b   : > { %398 = vst.msk [vmem:[#allocation10] sm:$0x3] %vm374_vm5, %v397_v24 }
 0x13c PF: > { %p1013_p4 = scmp.eq.s32.totalorder %s522_s18, 1  ;;  %s815_s10 = smov [#allocation9]  }
 0x13d   : > { %s408_s20 = sshll.u32 %s815_s10, 4  ;;  %s816_s22 = smov [#allocation10]   ;;  %s409_s20 = int_to_ptr.vmem [resolvable:$true] %s408_s20 }
 0x13e   : > { %s421_s30 = sshll.u32 %s816_s22, 4  ;;  %s691_s15 = scalar_lea.vmem %s409_s20, 32  ;;  %s1017_s30 = int_to_ptr.vmem [resolvable:$true] %s421_s30 }
 0x13f   : > { %p692_p1 = scmp.ne.s32.totalorder %s409_s20, %s691_s15  ;;  %p698_p0 = scmp.lt.s32.totalorder %s409_s20, %s409_s20 }
 0x140   : > { %p699_p10 = scmp.lt.s32.totalorder %s691_s15, %s691_s15 }
 0x141   : > { %p693_p2 = pnand %p692_p1, %p1013_p4 }
 0x142   : > { %p700_p5 = por %p699_p10, %p698_p0 }
 0x143   : > { %p694_p3 = pneg %p693_p2 }
 0x145   : > { %p701_p6 = pnand %p700_p5, %p694_p3 }
 0x147   : > { %704 = shalt.err (!%p701_p6)
}
 0x148   : > { %s705_s28 = scalar_lea.hbm %s1088_s2, 32 }
 0x149   : > { %p706_p11 = scmp.ne.s32.totalorder %s1088_s2, %s705_s28  ;;  %p711_p12 = scmp.lt.u32.totalorder %s705_s28, %s1088_s2 }
 0x14b   : > { %p707_p13 = pnand %p706_p11, %p1013_p4 }
 0x14d   : > { %p708_p8 = pneg %p707_p13 }
 0x14f   : > { %p713_p7 = pnand %p711_p12, %p708_p8 }
 0x151   : > { %716 = shalt.err (!%p713_p7)
}
 0x152   : > { %548 = dma.vmem_to_hbm [thread:$0]  (%p1013_p4), %s409_s20, 32, %s1088_s2, [#allocation6]  }
 0x153   : > { %s717_s12 = scalar_lea.vmem %s1017_s30, 32  ;;  %p724_p3 = scmp.lt.s32.totalorder %s1017_s30, %s1017_s30 }
 0x154   : > { %p718_p9 = scmp.ne.s32.totalorder %s1017_s30, %s717_s12  ;;  %p725_p0 = scmp.lt.s32.totalorder %s717_s12, %s717_s12 }
 0x156   : > { %p719_p1 = pnand %p718_p9, %p1013_p4  ;;  %p726_p10 = por %p725_p0, %p724_p3 }
 0x158   : > { %p720_p2 = pneg %p719_p1 }
 0x15a   : > { %p727_p5 = pnand %p726_p10, %p720_p2 }
 0x15c   : > { %730 = shalt.err (!%p727_p5)
}
 0x15d   : > { %s731_s7 = scalar_lea.hbm %s1089_s3, 32 }
 0x15e   : > { %p732_p6 = scmp.ne.s32.totalorder %s1089_s3, %s731_s7  ;;  %p737_p8 = scmp.lt.u32.totalorder %s731_s7, %s1089_s3 }
 0x160   : > { %p733_p11 = pnand %p732_p6, %p1013_p4 }
 0x162   : > { %p734_p13 = pneg %p733_p11 }
 0x164   : > { %p739_p12 = pnand %p737_p8, %p734_p13 }
 0x166   : > { %742 = shalt.err (!%p739_p12)
}
 0x167   : > { %550 = dma.vmem_to_hbm [thread:$0]  (%p1013_p4), %s1017_s30, 32, %s1089_s3, [#allocation11]  }
 0x168   : > { %776 = dma.done.wait (%p1013_p4), [#allocation6], 32  }
 0x169   : > { %778 = vsyncadd (%p1013_p4), [#allocation6], 4294967264 }
 0x16a   : > { %780 = dma.done.wait (%p1013_p4), [#allocation11], 32  }
 0x16b   : > { %782 = vsyncadd (%p1013_p4), [#allocation11], 4294967264 }
 0x16c PF: > { %s22_s17 = sadd.s32 1, %s805_s17   ;;  %s1099_s12 = smov %s789_s13 }
 0x16d   : > { %p19_p7 = scmp.ge.s32.totalorder %s22_s17, 4   ;;  %s1100_s13 = smov %s793_s14 }
 0x16e   : > { %s1101_s14 = smov %s888_s24  ;;  %s1102_s15 = smov %s801_s16 }
 0x16f   : > { %s1103_s16 = smov %s1105_s19  ;;  %21 = sbr.rel (!%p19_p7) target bundleno = 8 (0x8), region = 96 }
 0x176   :  { %438 = vsyncpa [#allocation5], 1 }
 0x177   :  { %440 = vsyncpa [#allocation5 + $0x1], 1 }
 0x178   :  { %441 = vsyncpa [#allocation8], 1 }
 0x179   :  { %443 = vsyncpa [#allocation8 + $0x1], 1 }
 0x17a   :  { %444 = vsyncpa [#allocation6], 1 }
 0x17b   :  { %446 = vsyncpa [#allocation6 + $0x1], 1 }
 0x17c   :  { %447 = vsyncpa [#allocation11], 1 }

</bundles_post_ra>
